<compile_context>
chip_gen: v7x
topology: tpu7x:2x2x1
jax: 0.10.0
libtpu: 0.0.40
codegen_flags: <defaults>
</compile_context>

<pallas_src>
import functools

import jax
import jax.numpy as jnp
from jax.experimental import pallas as pl
from jax.experimental.pallas import tpu as pltpu


def _round_up(x, m):
    return ((x + m - 1) // m) * m


def _ceil_div(a, b):
    return -(-a // b)


# ---------------------------------------------------------------------------
# Kernel
# ---------------------------------------------------------------------------
def mlp_logsoftmax_kernel(x_ref, w0_ref, b0_ref, w1_ref, b1_ref, w2_ref, b2_ref,
                          o_ref, *, valid_out):
    # Cast the streamed x tile to the weight dtype (no-op for the f32 path).
    x = x_ref[...].astype(w0_ref.dtype)

    # fc0 + ReLU (MXU accumulates in f32 regardless of operand dtype)
    h0 = jnp.dot(x, w0_ref[...], preferred_element_type=jnp.float32)
    h0 = jnp.maximum(h0 + b0_ref[...], 0.0)
    # fc1 + ReLU
    h1 = jnp.dot(h0.astype(w1_ref.dtype), w1_ref[...],
                 preferred_element_type=jnp.float32)
    h1 = jnp.maximum(h1 + b1_ref[...], 0.0)
    # fc2 + ReLU (the PyTorch module applies ReLU before log_softmax)
    h2 = jnp.dot(h1.astype(w2_ref.dtype), w2_ref[...],
                 preferred_element_type=jnp.float32)
    h2 = jnp.maximum(h2 + b2_ref[...], 0.0)

    # Mask zero-padded logit columns so they do not perturb the normalizer.
    cols = jax.lax.broadcasted_iota(jnp.int32, h2.shape, dimension=1)
    logits = jnp.where(cols < valid_out, h2, jnp.full_like(h2, -1e30))

    # Numerically stable log_softmax over dim=1 (all in f32).
    m = jnp.max(logits, axis=-1, keepdims=True)
    shifted = logits - m
    lse = jnp.log(jnp.sum(jnp.exp(shifted), axis=-1, keepdims=True))
    o_ref[...] = (shifted - lse).astype(o_ref.dtype)


# ---------------------------------------------------------------------------
# One-time parameter preparation (outside the hot path)
# ---------------------------------------------------------------------------
def prepare_params(w0, b0, w1, b1, w2, b2, *, compute_dtype=jnp.bfloat16, lane=128):
    """Pad feature dims of weights/biases to lane multiples and cast once.

    Weights go to `compute_dtype` (bf16 recommended on v5e/v6e/v7x: halves the
    resident weight bytes and runs the MXU at full bf16 rate); biases stay f32.
    The input dim D of w0 is NOT padded (a full-extent block is legal).
    """
    D, H0 = w0.shape
    H1 = w1.shape[1]
    H2 = w2.shape[1]
    H0p, H1p, H2p = (_round_up(h, lane) for h in (H0, H1, H2))
    f32 = jnp.float32

    w0p = jnp.zeros((D, H0p), compute_dtype).at[:, :H0].set(w0.astype(compute_dtype))
    w1p = jnp.zeros((H0p, H1p), compute_dtype).at[:H0, :H1].set(w1.astype(compute_dtype))
    w2p = jnp.zeros((H1p, H2p), compute_dtype).at[:H1, :H2].set(w2.astype(compute_dtype))
    b0p = jnp.zeros((1, H0p), f32).at[:, :H0].set(b0.reshape(1, H0).astype(f32))
    b1p = jnp.zeros((1, H1p), f32).at[:, :H1].set(b1.reshape(1, H1).astype(f32))
    b2p = jnp.zeros((1, H2p), f32).at[:, :H2].set(b2.reshape(1, H2).astype(f32))
    return (w0p, b0p, w1p, b1p, w2p, b2p), H2


# ---------------------------------------------------------------------------
# Batch tiling selection
# ---------------------------------------------------------------------------
def _choose_batch_tiling(B, D, x_itemsize, sublane, *, max_tile=1024,
                         vmem_budget=14 << 20, min_steps=1):
    """Pick (batch_tile, padded_B).

    - tiles are sublane multiples (8 f32 / 16 bf16), no forced 128-row pad
    - tile capped so double-buffered x tile + f32 output tile fit the budget
      (safe under the 16 MiB v5e / 32 MiB v6e/v7x default scoped VMEM limits)
    - min_steps >= 2 lets both v7x TensorCores take grid steps
    - step count chosen to minimize batch padding waste
    """
    per_row = 2 * (D * x_itemsize + 128 * 4)   # double-buffered x + f32 out row
    cap = (vmem_budget // per_row) // sublane * sublane
    cap = max(sublane, min(cap, max_tile))
    num_steps = max(min_steps, _ceil_div(B, cap))
    tile = _round_up(_ceil_div(B, num_steps), sublane)
    return tile, num_steps * tile


# ---------------------------------------------------------------------------
# Forward (hot path)
# ---------------------------------------------------------------------------
def mlp_forward(x, padded_params, num_classes=10, *, max_batch_tile=1024,
                min_grid_steps=1, slice_output=True):
    w0p, b0p, w1p, b1p, w2p, b2p = padded_params
    D = w0p.shape[0]
    x = x.reshape(-1, D)                      # x.view(-1, image_size)
    B = x.shape[0]
    H0p, H1p, H2p = w0p.shape[1], w1p.shape[1], w2p.shape[1]

    sublane = 16 if jnp.dtype(x.dtype).itemsize == 2 else 8
    tile, Bp = _choose_batch_tiling(B, D, jnp.dtype(x.dtype).itemsize, sublane,
                                    max_tile=max_batch_tile,
                                    min_steps=min_grid_steps)
    xp = x if Bp == B else jnp.pad(x, ((0, Bp - B), (0, 0)))
    grid = (Bp // tile,)

    w_item = jnp.dtype(w0p.dtype).itemsize
    flops = 2 * Bp * (D * H0p + H0p * H1p + H1p * H2p)
    bytes_accessed = (
        Bp * D * jnp.dtype(x.dtype).itemsize
        + (D * H0p + H0p * H1p + H1p * H2p) * w_item
        + (H0p + H1p + H2p) * 4
        + Bp * H2p * 4
    )
    cost = pl.CostEstimate(flops=int(flops),
                           transcendentals=int(Bp * H2p),
                           bytes_accessed=int(bytes_accessed))

    def _resident(shape):
        # Constant index_map -> fetched once, VMEM-resident; single-buffered to
        # avoid a dead second copy in VMEM (matters for large image_size / v7x).
        return pl.BlockSpec(shape, lambda i: (0, 0), pipeline_mode=pl.Buffered(1))

    out = pl.pallas_call(
        functools.partial(mlp_logsoftmax_kernel, valid_out=num_classes),
        out_shape=jax.ShapeDtypeStruct((Bp, H2p), jnp.float32),
        grid_spec=pl.GridSpec(
            grid=grid,
            in_specs=[
                pl.BlockSpec((tile, D), lambda i: (i, 0)),   # x tile (streamed)
                _resident((D, H0p)),                         # w0
                _resident((1, H0p)),                         # b0
                _resident((H0p, H1p)),                       # w1
                _resident((1, H1p)),                         # b1
                _resident((H1p, H2p)),                       # w2
                _resident((1, H2p)),                         # b2
            ],
            out_specs=pl.BlockSpec((tile, H2p), lambda i: (i, 0)),
        ),
        compiler_params=pltpu.CompilerParams(
            dimension_semantics=("parallel",),
        ),
        cost_estimate=cost,
    )(xp, w0p, b0p, w1p, b1p, w2p, b2p)

    if slice_output:
        # Optional: downstream consumers that tolerate the (Bp, 128) padded
        # layout can skip this wrapper-side copy entirely.
        out = out[:B, :num_classes]
    return out


# ---------------------------------------------------------------------------
# Reference + init
# ---------------------------------------------------------------------------
def init_params(key, image_size):
    # Deterministic synthetic init (uniform, scaled by fan-in), matching shapes of
    # nn.Linear(image_size,100), nn.Linear(100,50), nn.Linear(50,10).
    k0, k1, k2, k3, k4, k5 = jax.random.split(key, 6)

    def lin(kw, kb, fan_in, fan_out):
        bound = 1.0 / jnp.sqrt(fan_in)
        w = jax.random.uniform(kw, (fan_in, fan_out), jnp.float32, -bound, bound)
        b = jax.random.uniform(kb, (1, fan_out), jnp.float32, -bound, bound)
        return w, b

    w0, b0 = lin(k0, k1, image_size, 100)
    w1, b1 = lin(k2, k3, 100, 50)
    w2, b2 = lin(k4, k5, 50, 10)
    return w0, b0, w1, b1, w2, b2


def reference_forward(x, w0, b0, w1, b1, w2, b2):
    h = jnp.maximum(x @ w0 + b0, 0.0)
    h = jnp.maximum(h @ w1 + b1, 0.0)
    h = jnp.maximum(h @ w2 + b2, 0.0)
    return jax.nn.log_softmax(h, axis=1)


if __name__ == "__main__":
    image_size = 64   # small synthetic "flattened image" size
    batch = 16

    key = jax.random.PRNGKey(0)
    kx, kp = jax.random.split(key)

    # Non-flat input; the kernel wrapper applies x.view(-1, image_size).
    x = jax.random.normal(kx, (batch, 8, 8), jnp.float32)
    w0, b0, w1, b1, w2, b2 = init_params(kp, image_size)

    ref = reference_forward(x.reshape(-1, image_size), w0, b0, w1, b1, w2, b2)

    fwd = jax.jit(functools.partial(mlp_forward, num_classes=10))

    # f32 path: tight correctness check against the plain-JAX reference.
    params_f32, _ = prepare_params(w0, b0, w1, b1, w2, b2,
                                   compute_dtype=jnp.float32)
    out = jax.block_until_ready(fwd(x, params_f32))
    assert out.shape == (batch, 10)
    assert jnp.allclose(out, ref, atol=1e-5, rtol=1e-5), "f32 mismatch vs reference"

    # Recommended perf path (v5e/v6e/v7x): bf16 weights + bf16 x stream,
    # f32 MXU accumulation and f32 softmax math.  Loose check.
    params_bf16, _ = prepare_params(w0, b0, w1, b1, w2, b2,
                                    compute_dtype=jnp.bfloat16)
    out_bf16 = jax.block_until_ready(fwd(x.astype(jnp.bfloat16), params_bf16))
    assert out_bf16.shape == (batch, 10)
    assert float(jnp.max(jnp.abs(out_bf16 - ref))) < 0.1, "bf16 path diverged"

    print("KERNEL_OK")
</pallas_src>

<mosaic_0001>
module attributes {stable_mosaic.version = 11 : i64} {
  func.func @mlp_logsoftmax_kernel(%arg0: i32, %arg1: memref<16x64xf32, #tpu.memory_space<vmem>>, %arg2: memref<64x128xf32, #tpu.memory_space<vmem>>, %arg3: memref<1x128xf32, #tpu.memory_space<vmem>>, %arg4: memref<128x128xf32, #tpu.memory_space<vmem>>, %arg5: memref<1x128xf32, #tpu.memory_space<vmem>>, %arg6: memref<128x128xf32, #tpu.memory_space<vmem>>, %arg7: memref<1x128xf32, #tpu.memory_space<vmem>>, %arg8: memref<16x128xf32, #tpu.memory_space<vmem>>) attributes {dimension_semantics = [#tpu.dimension_semantics<parallel>], iteration_bounds = array<i64: 1>, scalar_prefetch = 0 : i64, scratch_operands = 0 : i64, tpu.core_type = #tpu.core_type<tc>, window_params = [{transform_indices = @transform_0, window_bounds = array<i64: 16, 64>}, {pipeline_mode = #tpu.pipeline_mode<synchronous>, transform_indices = @transform_1, window_bounds = array<i64: 64, 128>}, {pipeline_mode = #tpu.pipeline_mode<synchronous>, transform_indices = @transform_2, window_bounds = array<i64: 1, 128>}, {pipeline_mode = #tpu.pipeline_mode<synchronous>, transform_indices = @transform_3, window_bounds = array<i64: 128, 128>}, {pipeline_mode = #tpu.pipeline_mode<synchronous>, transform_indices = @transform_4, window_bounds = array<i64: 1, 128>}, {pipeline_mode = #tpu.pipeline_mode<synchronous>, transform_indices = @transform_5, window_bounds = array<i64: 128, 128>}, {pipeline_mode = #tpu.pipeline_mode<synchronous>, transform_indices = @transform_6, window_bounds = array<i64: 1, 128>}, {transform_indices = @transform_7, window_bounds = array<i64: 16, 128>}]} {
    %c0 = arith.constant 0 : index
    %c0_0 = arith.constant 0 : index
    %0 = vector.load %arg1[%c0, %c0_0] : memref<16x64xf32, #tpu.memory_space<vmem>>, vector<16x64xf32>
    %c0_1 = arith.constant 0 : index
    %c0_2 = arith.constant 0 : index
    %1 = vector.load %arg2[%c0_1, %c0_2] : memref<64x128xf32, #tpu.memory_space<vmem>>, vector<64x128xf32>
    %cst = arith.constant dense<0.000000e+00> : vector<16x128xf32>
    %2 = tpu.matmul %0, %1, %cst {dimension_numbers = #tpu.dot_dimension_numbers<[1], [0], [0], [1], [0, 0, 1, 1], [], []>} : vector<16x64xf32>, vector<64x128xf32>, vector<16x128xf32> -> vector<16x128xf32>
    %c0_3 = arith.constant 0 : index
    %c0_4 = arith.constant 0 : index
    %3 = vector.load %arg3[%c0_3, %c0_4] : memref<1x128xf32, #tpu.memory_space<vmem>>, vector<1x128xf32>
    %4 = vector.broadcast %3 : vector<1x128xf32> to vector<16x128xf32>
    %5 = arith.addf %2, %4 : vector<16x128xf32>
    %cst_5 = arith.constant 0.000000e+00 : f32
    %6 = vector.broadcast %cst_5 : f32 to vector<16x128xf32>
    %7 = arith.maximumf %5, %6 : vector<16x128xf32>
    %c0_6 = arith.constant 0 : index
    %c0_7 = arith.constant 0 : index
    %8 = vector.load %arg4[%c0_6, %c0_7] : memref<128x128xf32, #tpu.memory_space<vmem>>, vector<128x128xf32>
    %cst_8 = arith.constant dense<0.000000e+00> : vector<16x128xf32>
    %9 = tpu.matmul %7, %8, %cst_8 {dimension_numbers = #tpu.dot_dimension_numbers<[1], [0], [0], [1], [0, 0, 1, 1], [], []>} : vector<16x128xf32>, vector<128x128xf32>, vector<16x128xf32> -> vector<16x128xf32>
    %c0_9 = arith.constant 0 : index
    %c0_10 = arith.constant 0 : index
    %10 = vector.load %arg5[%c0_9, %c0_10] : memref<1x128xf32, #tpu.memory_space<vmem>>, vector<1x128xf32>
    %11 = vector.broadcast %10 : vector<1x128xf32> to vector<16x128xf32>
    %12 = arith.addf %9, %11 : vector<16x128xf32>
    %cst_11 = arith.constant 0.000000e+00 : f32
    %13 = vector.broadcast %cst_11 : f32 to vector<16x128xf32>
    %14 = arith.maximumf %12, %13 : vector<16x128xf32>
    %c0_12 = arith.constant 0 : index
    %c0_13 = arith.constant 0 : index
    %15 = vector.load %arg6[%c0_12, %c0_13] : memref<128x128xf32, #tpu.memory_space<vmem>>, vector<128x128xf32>
    %cst_14 = arith.constant dense<0.000000e+00> : vector<16x128xf32>
    %16 = tpu.matmul %14, %15, %cst_14 {dimension_numbers = #tpu.dot_dimension_numbers<[1], [0], [0], [1], [0, 0, 1, 1], [], []>} : vector<16x128xf32>, vector<128x128xf32>, vector<16x128xf32> -> vector<16x128xf32>
    %c0_15 = arith.constant 0 : index
    %c0_16 = arith.constant 0 : index
    %17 = vector.load %arg7[%c0_15, %c0_16] : memref<1x128xf32, #tpu.memory_space<vmem>>, vector<1x128xf32>
    %18 = vector.broadcast %17 : vector<1x128xf32> to vector<16x128xf32>
    %19 = arith.addf %16, %18 : vector<16x128xf32>
    %cst_17 = arith.constant 0.000000e+00 : f32
    %20 = vector.broadcast %cst_17 : f32 to vector<16x128xf32>
    %21 = arith.maximumf %19, %20 : vector<16x128xf32>
    %22 = tpu.iota {dimensions = array<i32: 1>} : vector<16x128xi32>
    %c10_i32 = arith.constant 10 : i32
    %23 = vector.broadcast %c10_i32 : i32 to vector<16x128xi32>
    %24 = arith.cmpi slt, %22, %23 : vector<16x128xi32>
    %cst_18 = arith.constant -1.000000e+30 : f32
    %25 = vector.broadcast %cst_18 : f32 to vector<16x128xf32>
    %26 = arith.select %24, %21, %25 : vector<16x128xi1>, vector<16x128xf32>
    %cst_19 = arith.constant dense<0xFF800000> : vector<16xf32>
    %27 = vector.multi_reduction <maximumf>, %26, %cst_19 [1] : vector<16x128xf32> to vector<16xf32>
    %28 = vector.shape_cast %27 : vector<16xf32> to vector<16x1xf32>
    %29 = vector.broadcast %28 : vector<16x1xf32> to vector<16x128xf32>
    %30 = arith.subf %26, %29 : vector<16x128xf32>
    %31 = math.exp %30 : vector<16x128xf32>
    %cst_20 = arith.constant dense<0.000000e+00> : vector<16xf32>
    %32 = vector.multi_reduction <add>, %31, %cst_20 [1] : vector<16x128xf32> to vector<16xf32>
    %33 = vector.shape_cast %32 : vector<16xf32> to vector<16x1xf32>
    %34 = math.log %33 : vector<16x1xf32>
    %35 = vector.broadcast %34 : vector<16x1xf32> to vector<16x128xf32>
    %36 = arith.subf %30, %35 : vector<16x128xf32>
    %c0_21 = arith.constant 0 : index
    %c0_22 = arith.constant 0 : index
    %37 = vector.load %arg8[%c0_21, %c0_22] : memref<16x128xf32, #tpu.memory_space<vmem>>, vector<16x128xf32>
    tpu.vector_store %arg8[%c0_21, %c0_22], %36 {strides = array<i32>} : memref<16x128xf32, #tpu.memory_space<vmem>>, vector<16x128xf32>,
    return
  }
  func.func @transform_0(%arg0: i32) -> (i32, i32) {
    %c0_i32 = arith.constant 0 : i32
    %c0_i32_0 = arith.constant 0 : i32
    return %arg0, %c0_i32 : i32, i32
  }
  func.func @transform_1(%arg0: i32) -> (i32, i32) {
    %c0_i32 = arith.constant 0 : i32
    %c0_i32_0 = arith.constant 0 : i32
    %c0_i32_1 = arith.constant 0 : i32
    return %c0_i32, %c0_i32_0 : i32, i32
  }
  func.func @transform_2(%arg0: i32) -> (i32, i32) {
    %c0_i32 = arith.constant 0 : i32
    %c0_i32_0 = arith.constant 0 : i32
    %c0_i32_1 = arith.constant 0 : i32
    return %c0_i32, %c0_i32_0 : i32, i32
  }
  func.func @transform_3(%arg0: i32) -> (i32, i32) {
    %c0_i32 = arith.constant 0 : i32
    %c0_i32_0 = arith.constant 0 : i32
    %c0_i32_1 = arith.constant 0 : i32
    return %c0_i32, %c0_i32_0 : i32, i32
  }
  func.func @transform_4(%arg0: i32) -> (i32, i32) {
    %c0_i32 = arith.constant 0 : i32
    %c0_i32_0 = arith.constant 0 : i32
    %c0_i32_1 = arith.constant 0 : i32
    return %c0_i32, %c0_i32_0 : i32, i32
  }
  func.func @transform_5(%arg0: i32) -> (i32, i32) {
    %c0_i32 = arith.constant 0 : i32
    %c0_i32_0 = arith.constant 0 : i32
    %c0_i32_1 = arith.constant 0 : i32
    return %c0_i32, %c0_i32_0 : i32, i32
  }
  func.func @transform_6(%arg0: i32) -> (i32, i32) {
    %c0_i32 = arith.constant 0 : i32
    %c0_i32_0 = arith.constant 0 : i32
    %c0_i32_1 = arith.constant 0 : i32
    return %c0_i32, %c0_i32_0 : i32, i32
  }
  func.func @transform_7(%arg0: i32) -> (i32, i32) {
    %c0_i32 = arith.constant 0 : i32
    %c0_i32_0 = arith.constant 0 : i32
    return %arg0, %c0_i32 : i32, i32
  }
}

</mosaic_0001>

<bundles_post_ra>
// kernel: mlp_forward.1
= control target key start
LH: loop header
LB: loop body
LE: loop exit
PB: predicated region body
PF: predicated region fallthrough
CT: control target
= control target key end

     0   :  { %12 = vsyncpa [#allocation3], 0  ;;  %s837_s0 = inlined_call_operand.vmem [shape: f32[16,64], index: 0, kind: input, shape index: {}]   ;;  %s838_s1 = inlined_call_operand.vmem [shape: f32[64,128], index: 1, kind: input, shape index: {}]   ;;  %s839_s2 = inlined_call_operand.vmem [shape: f32[1,128], index: 2, kind: input, shape index: {}]   ;;  %s840_s3 = inlined_call_operand.hbm [shape: f32[128,128], index: 3, kind: input, shape index: {}]   ;;  %s841_s4 = inlined_call_operand.vmem [shape: f32[1,128], index: 4, kind: input, shape index: {}]   ;;  %s842_s5 = inlined_call_operand.hbm [shape: f32[128,128], index: 5, kind: input, shape index: {}]   ;;  %s843_s6 = inlined_call_operand.vmem [shape: f32[1,128], index: 6, kind: input, shape index: {}]   ;;  %s844_s7 = inlined_call_operand.hbm [shape: f32[16,128], index: 7, kind: output, shape index: {}]  }
   0x1   :  { %13 = vsyncpa [#allocation6], 0 }
   0x2   :  { %14 = vsyncpa [#allocation4], 0  ;;  %s706_s24 = smov [#allocation2]   ;;  %s634_s28 = scalar_lea.hbm %s840_s3, 2048 }
   0x3   :  { %s26_s25 = sshll.u32 %s706_s24, 4  ;;  %p635_p0 = scmp.ne.s32.totalorder %s840_s3, %s634_s28  ;;  %s27_s25 = int_to_ptr.vmem [resolvable:$true] %s26_s25 }
   0x4   :  { %p638_p1 = scmp.lt.u32.totalorder %s634_s28, %s840_s3 }
   0x6   :  { %p640_p2 = pnand %p638_p1, %p635_p0 }
   0x8   :  { %643 = shalt.err (!%p640_p2)
}
   0x9   :  { %s644_s10 = scalar_lea.vmem %s27_s25, 2048  ;;  %p649_p4 = scmp.lt.s32.totalorder %s27_s25, %s27_s25 }
   0xa   :  { %p645_p3 = scmp.ne.s32.totalorder %s27_s25, %s644_s10  ;;  %p650_p5 = scmp.lt.s32.totalorder %s644_s10, %s644_s10 }
   0xc   :  { %p651_p6 = por %p650_p5, %p649_p4 }
   0xe   :  { %p652_p7 = pnand %p651_p6, %p645_p3 }
  0x10   :  { %655 = shalt.err (!%p652_p7)
}
  0x11   :  { %s707_s11 = smov 128   ;;  %s708_s12 = smov 8  }
  0x12   :  { %32 = dma.hbm_to_vmem [thread:$0]  %s840_s3, 2048, %s27_s25, [#allocation3], %s707_s11, %s707_s11, %s708_s12  }
  0x13   :  { %s709_s15 = smov [#allocation5]   ;;  %s656_s19 = scalar_lea.hbm %s842_s5, 2048 }
  0x14   :  { %s40_s16 = sshll.u32 %s709_s15, 4  ;;  %p657_p8 = scmp.ne.s32.totalorder %s842_s5, %s656_s19  ;;  %s41_s16 = int_to_ptr.vmem [resolvable:$true] %s40_s16 }
  0x15   :  { %p660_p9 = scmp.lt.u32.totalorder %s656_s19, %s842_s5 }
  0x17   :  { %p662_p10 = pnand %p660_p9, %p657_p8 }
  0x19   :  { %665 = shalt.err (!%p662_p10)
}
  0x1a   :  { %s666_s24 = scalar_lea.vmem %s41_s16, 2048  ;;  %p671_p12 = scmp.lt.s32.totalorder %s41_s16, %s41_s16 }
  0x1b   :  { %p667_p11 = scmp.ne.s32.totalorder %s41_s16, %s666_s24  ;;  %p672_p13 = scmp.lt.s32.totalorder %s666_s24, %s666_s24 }
  0x1d   :  { %p673_p0 = por %p672_p13, %p671_p12 }
  0x1f   :  { %p674_p1 = pnand %p673_p0, %p667_p11 }
  0x21   :  { %677 = shalt.err (!%p674_p1)
}
  0x22   :  { %46 = dma.hbm_to_vmem [thread:$0]  %s842_s5, 2048, %s41_s16, [#allocation6], %s707_s11, %s707_s11, %s708_s12  }
  0x23   :  { %700 = dma.done.wait [#allocation3], 2048  }
  0x24   :  { %701 = vsyncadd [#allocation3], 4294965248 }
  0x25   :  { %702 = dma.done.wait [#allocation6], 2048  }
  0x26   :  { %703 = vsyncadd [#allocation6], 4294965248  ;;  %v57_v0 = vld [vmem:[%s838_s1] sm:$0xff]  ;;  %v58_v1 = vld [vmem:[%s838_s1 + $0x8] sm:$0xff]  ;;  %vm72_vm0 = vcmask 523264  }
  0x27   :  { %v59_v2 = vld [vmem:[%s838_s1 + $0x10] sm:$0xff]  ;;  %v541_v3 = vpack.c.bf16 %v58_v1, %v57_v0  ;;  %v60_v4 = vld [vmem:[%s838_s1 + $0x18] sm:$0xff]  ;;  %v61_v6 = vld [vmem:[%s838_s1 + $0x20] sm:$0xff] }
  0x28   :  { %v545_v5 = vpack.c.bf16 %v60_v4, %v59_v2  ;;  %v62_v7 = vld [vmem:[%s838_s1 + $0x28] sm:$0xff]  ;;  %v55_v8 = vld [vmem:[%s837_s0] sm:$0xff]  ;;  %v158_v12 = vld [vmem:[#allocation2 + $0x10] sm:$0xff] }
  0x29   :  { %542 = vmatprep.subr.bf16.mxu0 %v541_v3  ;;  %468 = vmatprep.mubr.msk.f32.mxu0 %vm72_vm0, %v55_v8  ;;  %v156_v9 = vld [vmem:[#allocation2] sm:$0xff]  ;;  %v157_v10 = vld [vmem:[#allocation2 + $0x8] sm:$0xff]  ;;  %v159_v13 = vld [vmem:[#allocation2 + $0x18] sm:$0xff]  ;;  %v549_v14 = vpack.c.bf16 %v62_v7, %v61_v6 }
  0x2a   :  { %544 = vmatpush3.bf16.msra.mxu0 %v541_v3  ;;  %v557_v11 = vpack.c.bf16 %v157_v10, %v156_v9  ;;  %v561_v15 = vpack.c.bf16 %v159_v13, %v158_v12  ;;  %v160_v16 = vld [vmem:[#allocation2 + $0x20] sm:$0xff]  ;;  %v161_v17 = vld [vmem:[#allocation2 + $0x28] sm:$0xff]  ;;  %v63_v18 = vld [vmem:[%s838_s1 + $0x30] sm:$0xff]  ;;  %v356_v12 = vlaneseq }
  0x2b   :  { %546 = vmatprep.subr.bf16.mxu0 %v545_v5  ;;  %v64_v19 = vld [vmem:[%s838_s1 + $0x38] sm:$0xff]  ;;  %v565_v20 = vpack.c.bf16 %v161_v17, %v160_v16  ;;  %v162_v22 = vld [vmem:[#allocation2 + $0x30] sm:$0xff]  ;;  %v164_v25 = vld [vmem:[#allocation2 + $0x40] sm:$0xff] }
  0x2c   :  { %558 = vmatprep.subr.bf16.mxu1 %v557_v11  ;;  %v553_v21 = vpack.c.bf16 %v64_v19, %v63_v18  ;;  %v163_v23 = vld [vmem:[#allocation2 + $0x38] sm:$0xff]  ;;  %v165_v26 = vld [vmem:[#allocation2 + $0x48] sm:$0xff]  ;;  %v166_v29 = vld [vmem:[#allocation2 + $0x50] sm:$0xff] }
  0x2d   :  { %560 = vmatpush3.bf16.msra.mxu1 %v557_v11  ;;  %v569_v24 = vpack.c.bf16 %v163_v23, %v162_v22  ;;  %v56_v27 = vld [vmem:[%s837_s0 + $0x8] sm:$0xff]  ;;  %v573_v28 = vpack.c.bf16 %v165_v26, %v164_v25  ;;  %v167_v30 = vld [vmem:[#allocation2 + $0x58] sm:$0xff]  ;;  %v168_v32 = vld [vmem:[#allocation2 + $0x60] sm:$0xff] }
  0x2e   :  { %548 = vmatpush3.bf16.msra.mxu0 %v545_v5  ;;  %562 = vmatprep.subr.bf16.mxu1 %v561_v15  ;;  %v577_v31 = vpack.c.bf16 %v167_v30, %v166_v29  ;;  %v169_v33 = vld [vmem:[#allocation2 + $0x68] sm:$0xff]  ;;  %v170_v35 = vld [vmem:[#allocation2 + $0x70] sm:$0xff]  ;;  %v171_v36 = vld [vmem:[#allocation2 + $0x78] sm:$0xff] }
  0x2f   :  { %550 = vmatprep.subr.bf16.mxu0 %v549_v14  ;;  %v581_v34 = vpack.c.bf16 %v169_v33, %v168_v32  ;;  %v585_v37 = vpack.c.bf16 %v171_v36, %v170_v35  ;;  %v256_v38 = vld [vmem:[#allocation5] sm:$0xff]  ;;  %v257_v39 = vld [vmem:[#allocation5 + $0x8] sm:$0xff]  ;;  %v258_v40 = vld [vmem:[#allocation5 + $0x10] sm:$0xff] }
  0x30   :  { %v589_v41 = vpack.c.bf16 %v257_v39, %v256_v38  ;;  %v259_v42 = vld [vmem:[#allocation5 + $0x18] sm:$0xff]  ;;  %v260_v44 = vld [vmem:[#allocation5 + $0x20] sm:$0xff]  ;;  %v261_v45 = vld [vmem:[#allocation5 + $0x28] sm:$0xff] }
  0x31   :  { %564 = vmatpush3.bf16.msra.mxu1 %v561_v15  ;;  %v593_v43 = vpack.c.bf16 %v259_v42, %v258_v40  ;;  %v597_v46 = vpack.c.bf16 %v261_v45, %v260_v44  ;;  %v262_v47 = vld [vmem:[#allocation5 + $0x30] sm:$0xff]  ;;  %v263_v48 = vld [vmem:[#allocation5 + $0x38] sm:$0xff]  ;;  %v264_v50 = vld [vmem:[#allocation5 + $0x40] sm:$0xff] }
  0x32   :  { %552 = vmatpush3.bf16.msra.mxu0 %v549_v14  ;;  %566 = vmatprep.subr.bf16.mxu1 %v565_v20  ;;  %v601_v49 = vpack.c.bf16 %v263_v48, %v262_v47  ;;  %v265_v51 = vld [vmem:[#allocation5 + $0x48] sm:$0xff]  ;;  %v266_v53 = vld [vmem:[#allocation5 + $0x50] sm:$0xff]  ;;  %v267_v54 = vld [vmem:[#allocation5 + $0x58] sm:$0xff]  ;;  %v357_v14 = vand.u32 127, %v356_v12 }
  0x33   :  { %554 = vmatprep.subr.bf16.mxu0 %v553_v21  ;;  %v605_v52 = vpack.c.bf16 %v265_v51, %v264_v50  ;;  %v609_v55 = vpack.c.bf16 %v267_v54, %v266_v53  ;;  %v268_v56 = vld [vmem:[#allocation5 + $0x60] sm:$0xff]  ;;  %v269_v57 = vld [vmem:[#allocation5 + $0x68] sm:$0xff]  ;;  %v270_v2 = vld [vmem:[#allocation5 + $0x70] sm:$0xff] }
  0x34   :  { %v613_v58 = vpack.c.bf16 %v269_v57, %v268_v56  ;;  %v401_v59 = vld [vmem:[%s839_s2] ss:$0 sm:$0xff]  ;;  %v271_v3 = vld [vmem:[#allocation5 + $0x78] sm:$0xff]  ;;  %vm358_vm1 = vcmp.lt.s32.totalorder %v357_v14, 10 }
  0x35   :  { %568 = vmatpush3.bf16.msra.mxu1 %v565_v20  ;;  %v617_v4 = vpack.c.bf16 %v271_v3, %v270_v2  ;;  %v404_v5 = vld [vmem:[%s841_s4] ss:$0 sm:$0xff]  ;;  %s710_s4 = smov [#allocation7]  }
  0x36   :  { %556 = vmatpush3.bf16.msra.mxu0 %v553_v21  ;;  %570 = vmatprep.subr.bf16.mxu1 %v569_v24  ;;  %v405_v13 = vld [vmem:[%s843_s6] ss:$0 sm:$0xff]  ;;  %s388_s6 = sshll.u32 %s710_s4, 4  ;;  %s389_s6 = int_to_ptr.vmem [resolvable:$true] %s388_s6 }
  0x37   :  { %590 = vmatprep.subr.bf16.mxu0 %v589_v41  ;;  %s678_s26 = scalar_lea.vmem %s389_s6, 256  ;;  %p683_p3 = scmp.lt.s32.totalorder %s389_s6, %s389_s6 }
  0x38   :  { %p679_p2 = scmp.ne.s32.totalorder %s389_s6, %s678_s26  ;;  %p684_p4 = scmp.lt.s32.totalorder %s678_s26, %s678_s26 }
  0x39   :  { %469 = vmatmul.mubr.msk.f32.vlgmr.msra.gmra.mrb[0].mxu0 %vm72_vm0, %v56_v27  ;;  %572 = vmatpush3.bf16.msra.mxu1 %v569_v24 }
  0x3a   :  { %574 = vmatprep.subr.bf16.mxu1 %v573_v28  ;;  %592 = vmatpush3.bf16.msra.mxu0 %v589_v41  ;;  %p685_p5 = por %p684_p4, %p683_p3 }
  0x3b   :  { %594 = vmatprep.subr.bf16.mxu0 %v593_v43 }
  0x3c   :  { %p686_p6 = pnand %p685_p5, %p679_p2 }
  0x3d   :  { %576 = vmatpush3.bf16.msra.mxu1 %v573_v28 }
  0x3e   :  { %578 = vmatprep.subr.bf16.mxu1 %v577_v31  ;;  %596 = vmatpush3.bf16.msra.mxu0 %v593_v43 }
  0x3f   :  { %598 = vmatprep.subr.bf16.mxu0 %v597_v46 }
  0x41   :  { %580 = vmatpush3.bf16.msra.mxu1 %v577_v31 }
  0x42   :  { %582 = vmatprep.subr.bf16.mxu1 %v581_v34  ;;  %600 = vmatpush3.bf16.msra.mxu0 %v597_v46 }
  0x43   :  { %602 = vmatprep.subr.bf16.mxu0 %v601_v49 }
  0x45   :  { %584 = vmatpush3.bf16.msra.mxu1 %v581_v34 }
  0x46   :  { %586 = vmatprep.subr.bf16.mxu1 %v585_v37  ;;  %604 = vmatpush3.bf16.msra.mxu0 %v601_v49 }
  0x47   :  { %606 = vmatprep.subr.bf16.mxu0 %v605_v52 }
  0x49   :  { %588 = vmatpush3.bf16.msra.mxu1 %v585_v37 }
  0x4a   :  { %608 = vmatpush3.bf16.msra.mxu0 %v605_v52 }
  0x4b   :  { %610 = vmatprep.subr.bf16.mxu0 %v609_v55 }
  0x4e   :  { %612 = vmatpush3.bf16.msra.mxu0 %v609_v55 }
  0x4f   :  { %614 = vmatprep.subr.bf16.mxu0 %v613_v58 }
  0x52   :  { %616 = vmatpush3.bf16.msra.mxu0 %v613_v58 }
  0x53   :  { %618 = vmatprep.subr.bf16.mxu0 %v617_v4 }
  0x56   :  { %620 = vmatpush3.bf16.msra.mxu0 %v617_v4 }
 0x10c   :  { %v470_v60 = vpop.f32.mrb[0].mxu0 }
 0x10d   :  { %v151_v61 = vadd.f32 %v470_v60, %v401_v59  ;;  %v145_v62 = vpop.f32.mrb[1].mxu0 }
 0x10e   :  { %v146_v63 = vadd.f32 %v401_v59, %v145_v62 }
 0x10f   :  { %v155_v1 = vmax.f32 %v151_v61, 0.0 }
 0x110   :  { %v154_v0 = vmax.f32 %v146_v63, 0.0 }
 0x112   :  { %503 = vmatprep.mubr.f32.mxu1 %v154_v0 }
 0x113   :  { %504 = vmatmul.mubr.f32.vlgmr.msra.gmra.mrb[0].mxu1 %v155_v1 }
 0x1e6   :  { %v505_v6 = vpop.f32.mrb[0].mxu1 }
 0x1e7   :  { %v251_v7 = vadd.f32 %v505_v6, %v404_v5  ;;  %v245_v8 = vpop.f32.mrb[1].mxu1 }
 0x1e8   :  { %v246_v9 = vadd.f32 %v404_v5, %v245_v8 }
 0x1e9   :  { %v255_v11 = vmax.f32 %v251_v7, 0.0 }
 0x1ea   :  { %v254_v10 = vmax.f32 %v246_v9, 0.0 }
 0x1ec   :  { %538 = vmatprep.mubr.f32.mxu0 %v254_v10 }
 0x1ed   :  { %539 = vmatmul.mubr.f32.vlgmr.msra.gmra.mrb[2].mxu0 %v255_v11 }
 0x2c0   :  { %v540_v15 = vpop.f32.mrb[2].mxu0 }
 0x2c1   :  { %v345_v16 = vpop.f32.mrb[3].mxu0  ;;  %v351_v17 = vadd.f32 %v540_v15, %v405_v13 }
 0x2c2   :  { %v346_v18 = vadd.f32 %v405_v13, %v345_v16 }
 0x2c3   :  { %v355_v20 = vmax.f32 %v351_v17, 0.0 }
 0x2c4   :  { %v354_v19 = vmax.f32 %v346_v18, 0.0 }
 0x2c5   :  { %v360_v22 = vsel %vm358_vm1, %v355_v20, -1e+30 }
 0x2c6   :  { %v359_v21 = vsel %vm358_vm1, %v354_v19, -1e+30 }
 0x2c7   :  { %361 = vmax.xlane.f32.xlu0 %v359_v21 }
 0x2cb   :  { %363 = vmax.xlane.f32.xlu0 %v360_v22 }
 0x354   :  { %v362_v23 = vpop.xlane.xlu0 %361 }
 0x355   :  { %v365_v24 = vsub.f32 %v359_v21, %v362_v23 }
 0x357   :  { %v367_v25 = vmul.f32 1.442695, %v365_v24 }
 0x358   :  { %v364_v26 = vpop.xlane.xlu0 %363 }
 0x359   :  { %v366_v27 = vsub.f32 %v360_v22, %v364_v26  ;;  %626 = vpow2.f32 %v367_v25 }
 0x35b   :  { %v369_v28 = vmul.f32 1.442695, %v366_v27 }
 0x35d   :  { %628 = vpow2.f32 %v369_v28 }
 0x363   :  { %v627_v29 = vpop.eup %626 }
 0x364   :  { %371 = vadd.xlane.f32.xlu1 %v627_v29 }
 0x367   :  { %v629_v30 = vpop.eup %628 }
 0x368   :  { %373 = vadd.xlane.f32.xlu1 %v629_v30 }
 0x3f1   :  { %v372_v31 = vpop.xlane.xlu1 %371 }
 0x3f2   :  { %630 = vlog2.f32 %v372_v31 }
 0x3f5   :  { %v374_v32 = vpop.xlane.xlu1 %373 }
 0x3f6   :  { %632 = vlog2.f32 %v374_v32 }
 0x3fc   :  { %v631_v33 = vpop.eup %630 }
 0x3fd   :  { %v376_v34 = vmul.f32 0.6931472, %v631_v33 }
 0x3ff   :  { %v379_v35 = vsub.f32 %v365_v24, %v376_v34 }
 0x400   :  { %v633_v36 = vpop.eup %632 }
 0x401   :  { %381 = vst [vmem:[#allocation7] sm:$0xff] %v379_v35  ;;  %v378_v37 = vmul.f32 0.6931472, %v633_v36 }
 0x403   :  { %v380_v38 = vsub.f32 %v366_v27, %v378_v37 }
 0x405   :  { %382 = vst [vmem:[#allocation7 + $0x8] sm:$0xff] %v380_v38 }
 0x406   :  { %689 = shalt.err (!%p686_p6)
}
 0x407   :  { %s690_s29 = scalar_lea.hbm %s844_s7, 256 }
 0x408   :  { %p691_p7 = scmp.ne.s32.totalorder %s844_s7, %s690_s29  ;;  %p694_p8 = scmp.lt.u32.totalorder %s690_s29, %s844_s7 }
 0x40a   :  { %p696_p9 = pnand %p694_p8, %p691_p7 }
 0x40c   :  { %699 = shalt.err (!%p696_p9)
}
 0x40d   :  { %394 = dma.vmem_to_hbm [thread:$0]  %s389_s6, 256, %s844_s7, [#allocation4], %s707_s11, %s707_s11, %s708_s12  }
 0x40e   :  { %704 = dma.done.wait [#allocation4], 256  }
 0x40f   :  { %705 = vsyncadd [#allocation4], 4294967040 }
 0x410   :  { %398 = vsyncpa [#allocation3], 1 }
 0x411   :  { %399 = vsyncpa [#allocation6], 1 }
 0x412   :  { %400 = vsyncpa [#allocation4], 1 }

</bundles_post_ra>
